<compile_context>
chip_gen: v5e
topology: v5e:2x2
jax: 0.10.0
libtpu: 0.0.40
codegen_flags: <defaults>
</compile_context>

<pallas_src>
import functools

import jax
import jax.numpy as jnp
from jax import lax
from jax.experimental import pallas as pl
from jax.experimental.pallas import tpu as pltpu

_NEG_LARGE = -1e30  # finite "-inf" for masking padded passage columns


def _biencoder_loss_kernel(q_ref, p_full_ref, p_diag_ref, row_loss_ref, *, n_actual, tq):
    i = pl.program_id(0)

    q = q_ref[...]           # [TQ, D]
    p_all = p_full_ref[...]  # [N_pad, D]   (resident across the grid; constant block index)
    p_diag = p_diag_ref[...]  # [TQ, D]     (rows matching this q tile -> diagonal entries)

    # scores[r, c] = q[r] . p[c]; contract dim 1 against dim 1 so Mosaic feeds p in its
    # natural [N, D] layout to the MXU (no explicit transpose).
    scores = lax.dot_general(
        q, p_all,
        dimension_numbers=(((1,), (1,)), ((), ())),
        preferred_element_type=jnp.float32,
    )                                                      # [TQ, N_pad] f32

    tq_, n_pad = scores.shape

    # Mask padded passage columns so they don't perturb the softmax denominator.
    if n_pad != n_actual:
        col_idx = lax.broadcasted_iota(jnp.int32, (tq_, n_pad), 1)
        scores = jnp.where(col_idx < n_actual, scores, _NEG_LARGE)

    # logsumexp over dim=1 (row-wise softmax denominator, numerically stable).
    m = jnp.max(scores, axis=1, keepdims=True)                               # [TQ, 1]
    lse = m + jnp.log(jnp.sum(jnp.exp(scores - m), axis=1, keepdims=True))   # [TQ, 1]

    # Diagonal score for global row r = i*TQ + local: q[r] . p[r], computed elementwise
    # on the VPU (no N^2 temporaries).
    diag = jnp.sum(q.astype(jnp.float32) * p_diag.astype(jnp.float32),
                   axis=1, keepdims=True)                                    # [TQ, 1]

    # -log(softmax(scores)[r, r]) == lse[r] - scores[r, r]
    row_loss = lse - diag                                                    # [TQ, 1]

    # Zero out padded query rows; wrapper divides by the true N.
    if tq_ * (i + 1) is not None:  # always true; keeps masking local to the kernel
        row_idx = i * tq + lax.broadcasted_iota(jnp.int32, (tq_, 1), 0)
        row_loss = jnp.where(row_idx < n_actual, row_loss, 0.0)

    row_loss_ref[...] = row_loss


def _round_up(x, m):
    return (x + m - 1) // m * m


def biencoder_loss(q_vectors, p_vectors, *, compute_dtype=None, tq=None):
    """q_vectors: [N, D], p_vectors: [N, D] -> scalar f32 loss.

    compute_dtype: optionally cast inputs (e.g. jnp.bfloat16) before the kernel for
    2x MXU throughput / half the DMA bytes; accumulation & softmax stay f32.
    """
    n, d = q_vectors.shape
    assert p_vectors.shape == (n, d), "expects same number of q and p vectors (square score matrix)"

    if compute_dtype is not None:
        q_vectors = q_vectors.astype(compute_dtype)
        p_vectors = p_vectors.astype(compute_dtype)

    # Tile over query rows: multiples of 8 (sublane); prefer 256-aligned tiles for the
    # v6e/v7x 256^2 MXU when N is large enough.
    if tq is None:
        tq = min(_round_up(n, 8), 256)
    tq = max(8, _round_up(tq, 8))
    n_pad = _round_up(n, tq)
    num_tiles = n_pad // tq

    if n_pad != n:
        pad = ((0, n_pad - n), (0, 0))
        q_p = jnp.pad(q_vectors, pad)
        p_p = jnp.pad(p_vectors, pad)
    else:
        q_p, p_p = q_vectors, p_vectors

    itemsize = jnp.dtype(q_p.dtype).itemsize
    # Resident p + double-buffered (q, p-diag) tiles + f32 score tile & softmax temps + margin.
    vmem_bytes = (2 * itemsize * n_pad * d
                  + 4 * itemsize * tq * d
                  + 4 * 4 * tq * n_pad
                  + (8 << 20))
    vmem_bytes = int(min(max(vmem_bytes, 32 << 20), 64 << 20))

    cost = pl.CostEstimate(
        flops=2 * n * n * d,
        transcendentals=n * n,
        bytes_accessed=2 * itemsize * n * d + 4 * n,
    )

    kernel = functools.partial(_biencoder_loss_kernel, n_actual=n, tq=tq)

    row_losses = pl.pallas_call(
        kernel,
        out_shape=jax.ShapeDtypeStruct((n_pad, 1), jnp.float32),
        grid=(num_tiles,),
        in_specs=[
            pl.BlockSpec((tq, d), lambda i: (i, 0)),      # q row tile
            pl.BlockSpec((n_pad, d), lambda i: (0, 0)),   # full p, stays resident
            pl.BlockSpec((tq, d), lambda i: (i, 0)),      # matching p rows (diagonal)
        ],
        out_specs=pl.BlockSpec((tq, 1), lambda i: (i, 0)),
        compiler_params=pltpu.CompilerParams(
            dimension_semantics=("parallel",),
            vmem_limit_bytes=vmem_bytes,
        ),
        cost_estimate=cost,
    )(q_p, p_p, p_p)

    return jnp.sum(row_losses) / n


if __name__ == "__main__":
    key = jax.random.PRNGKey(0)
    kq, kp = jax.random.split(key)
    N, D = 8, 32  # small shapes: 8 query/passage pairs, hidden=32
    q = jax.random.normal(kq, (N, D), dtype=jnp.float32)
    p = jax.random.normal(kp, (N, D), dtype=jnp.float32)

    loss = biencoder_loss(q, p)
    jax.block_until_ready(loss)

    # pure-JAX reference check
    scores = q @ p.T
    ref = jnp.mean(-jnp.log(jnp.diag(jax.nn.softmax(scores, axis=1))))
    assert jnp.allclose(loss, ref, atol=1e-5, rtol=1e-5), (loss, ref)

    print("KERNEL_OK")
</pallas_src>

<mosaic_0001>
module attributes {stable_mosaic.version = 11 : i64} {
  func.func @_biencoder_loss_kernel(%arg0: i32, %arg1: memref<8x32xf32, #tpu.memory_space<vmem>>, %arg2: memref<8x32xf32, #tpu.memory_space<vmem>>, %arg3: memref<8x32xf32, #tpu.memory_space<vmem>>, %arg4: memref<8x1xf32, #tpu.memory_space<vmem>>) attributes {dimension_semantics = [#tpu.dimension_semantics<parallel>], iteration_bounds = array<i64: 1>, scalar_prefetch = 0 : i64, scratch_operands = 0 : i64, tpu.core_type = #tpu.core_type<tc>, window_params = [{transform_indices = @transform_0, window_bounds = array<i64: 8, 32>}, {pipeline_mode = #tpu.pipeline_mode<synchronous>, transform_indices = @transform_1, window_bounds = array<i64: 8, 32>}, {transform_indices = @transform_2, window_bounds = array<i64: 8, 32>}, {transform_indices = @transform_3, window_bounds = array<i64: 8, 1>}]} {
    %c0 = arith.constant 0 : index
    %c0_0 = arith.constant 0 : index
    %0 = vector.load %arg1[%c0, %c0_0] : memref<8x32xf32, #tpu.memory_space<vmem>>, vector<8x32xf32>
    %c0_1 = arith.constant 0 : index
    %c0_2 = arith.constant 0 : index
    %1 = vector.load %arg2[%c0_1, %c0_2] : memref<8x32xf32, #tpu.memory_space<vmem>>, vector<8x32xf32>
    %c0_3 = arith.constant 0 : index
    %c0_4 = arith.constant 0 : index
    %2 = vector.load %arg3[%c0_3, %c0_4] : memref<8x32xf32, #tpu.memory_space<vmem>>, vector<8x32xf32>
    %cst = arith.constant dense<0.000000e+00> : vector<8x8xf32>
    %3 = tpu.matmul %0, %1, %cst {dimension_numbers = #tpu.dot_dimension_numbers<[1], [1], [0], [0], [0, 0, 1, 0], [], []>} : vector<8x32xf32>, vector<8x32xf32>, vector<8x8xf32> -> vector<8x8xf32>
    %cst_5 = arith.constant dense<0xFF800000> : vector<8xf32>
    %4 = vector.multi_reduction <maximumf>, %3, %cst_5 [1] : vector<8x8xf32> to vector<8xf32>
    %5 = vector.shape_cast %4 : vector<8xf32> to vector<8x1xf32>
    %6 = vector.broadcast %5 : vector<8x1xf32> to vector<8x8xf32>
    %7 = arith.subf %3, %6 : vector<8x8xf32>
    %8 = math.exp %7 : vector<8x8xf32>
    %cst_6 = arith.constant dense<0.000000e+00> : vector<8xf32>
    %9 = vector.multi_reduction <add>, %8, %cst_6 [1] : vector<8x8xf32> to vector<8xf32>
    %10 = vector.shape_cast %9 : vector<8xf32> to vector<8x1xf32>
    %11 = math.log %10 : vector<8x1xf32>
    %12 = arith.addf %5, %11 : vector<8x1xf32>
    %13 = arith.mulf %0, %2 : vector<8x32xf32>
    %cst_7 = arith.constant dense<0.000000e+00> : vector<8xf32>
    %14 = vector.multi_reduction <add>, %13, %cst_7 [1] : vector<8x32xf32> to vector<8xf32>
    %15 = vector.shape_cast %14 : vector<8xf32> to vector<8x1xf32>
    %16 = arith.subf %12, %15 : vector<8x1xf32>
    %c8_i32 = arith.constant 8 : i32
    %17 = arith.muli %arg0, %c8_i32 : i32
    %18 = tpu.iota {dimensions = array<i32: 0>} : vector<8x1xi32>
    %19 = vector.broadcast %17 : i32 to vector<8x1xi32>
    %20 = arith.addi %19, %18 : vector<8x1xi32>
    %c8_i32_8 = arith.constant 8 : i32
    %21 = vector.broadcast %c8_i32_8 : i32 to vector<8x1xi32>
    %22 = arith.cmpi slt, %20, %21 : vector<8x1xi32>
    %cst_9 = arith.constant 0.000000e+00 : f32
    %23 = vector.broadcast %cst_9 : f32 to vector<8x1xf32>
    %24 = arith.select %22, %16, %23 : vector<8x1xi1>, vector<8x1xf32>
    %c0_10 = arith.constant 0 : index
    %c0_11 = arith.constant 0 : index
    %25 = vector.load %arg4[%c0_10, %c0_11] : memref<8x1xf32, #tpu.memory_space<vmem>>, vector<8x1xf32>
    tpu.vector_store %arg4[%c0_10, %c0_11], %24 {strides = array<i32>} : memref<8x1xf32, #tpu.memory_space<vmem>>, vector<8x1xf32>,
    return
  }
  func.func @transform_0(%arg0: i32) -> (i32, i32) {
    %c0_i32 = arith.constant 0 : i32
    %c0_i32_0 = arith.constant 0 : i32
    return %arg0, %c0_i32 : i32, i32
  }
  func.func @transform_1(%arg0: i32) -> (i32, i32) {
    %c0_i32 = arith.constant 0 : i32
    %c0_i32_0 = arith.constant 0 : i32
    %c0_i32_1 = arith.constant 0 : i32
    return %c0_i32, %c0_i32_0 : i32, i32
  }
  func.func @transform_2(%arg0: i32) -> (i32, i32) {
    %c0_i32 = arith.constant 0 : i32
    %c0_i32_0 = arith.constant 0 : i32
    return %arg0, %c0_i32 : i32, i32
  }
  func.func @transform_3(%arg0: i32) -> (i32, i32) {
    %c0_i32 = arith.constant 0 : i32
    %c0_i32_0 = arith.constant 0 : i32
    return %arg0, %c0_i32 : i32, i32
  }
}

</mosaic_0001>

<bundles_post_ra>
// kernel: tpu_custom_call.1
= control target key start
LH: loop header
LB: loop body
LE: loop exit
PB: predicated region body
PF: predicated region fallthrough
CT: control target
= control target key end

     0   :  { %8 = vsyncpa [#allocation3], 0  ;;  %s238_s0 = inlined_call_operand.hbm [shape: f32[8,32], index: 0, kind: input, shape index: {}]   ;;  %s239_s1 = inlined_call_operand.hbm [shape: f32[8,32], index: 1, kind: input, shape index: {}]   ;;  %s240_s2 = inlined_call_operand.hbm [shape: f32[8,32], index: 2, kind: input, shape index: {}]   ;;  %s241_s3 = inlined_call_operand.vmem [shape: f32[8,1], index: 3, kind: output, shape index: {}]  }
   0x1   :  { %9 = vsyncpa [#allocation5], 0  ;;  %s26_s14 = sshll.u32 %s239_s1, 4  ;;  %s203_s15 = smov [#allocation4]   ;;  %s27_s14 = int_to_ptr.hbm [resolvable:$true] %s26_s14 }
   0x2   :  { %s28_s16 = sshll.u32 %s203_s15, 4  ;;  %s15_s19 = sshll.u32 %s238_s0, 4  ;;  %s29_s16 = int_to_ptr.vmem [resolvable:$true] %s28_s16  ;;  %s16_s19 = int_to_ptr.hbm [resolvable:$true] %s15_s19 }
   0x3   :  { %31 = dma.hbm_to_vmem [thread:$0]  %s27_s14, 128, %s29_s16, [#allocation5]  }
   0x4   :  { %s204_s20 = smov [#allocation2]   ;;  %s37_s24 = sshll.u32 %s240_s2, 4  ;;  %s38_s24 = int_to_ptr.hbm [resolvable:$true] %s37_s24 }
   0x5   :  { %s17_s21 = sshll.u32 %s204_s20, 4  ;;  %s205_s1 = smov [#allocation6]   ;;  %s18_s21 = int_to_ptr.vmem [resolvable:$true] %s17_s21 }
   0x6   :  { %20 = dma.hbm_to_vmem [thread:$0]  %s16_s19, 128, %s18_s21, [#allocation3]  }
   0x7   :  { %s39_s25 = sshll.u32 %s205_s1, 4  ;;  %s40_s25 = int_to_ptr.vmem [resolvable:$true] %s39_s25 }
   0x8   :  { %42 = dma.hbm_to_vmem [thread:$0]  %s38_s24, 128, %s40_s25, [#allocation5]  }
   0x9   :  { %199 = dma.done.wait [#allocation3], 128  }
   0xa   :  { %200 = vsyncadd [#allocation3], 4294967168 }
   0xb   :  { %201 = dma.done.wait [#allocation5], 256  }
   0xc   :  { %202 = vsyncadd [#allocation5], 4294967040  ;;  %vm58_vm0 = vcmask 261120   ;;  %v56_v0 = vld [vmem:[#allocation4] sm:$0xff]  ;;  %v55_v1 = vld [vmem:[#allocation2] sm:$0xff]  ;;  %vm85_vm1 = vcmask 64512  }
   0xd   :  { %118 = vmatpush.xpose.msk.msra.mxu0 %vm58_vm0, %v56_v0  ;;  %v57_v4 = vld [vmem:[#allocation6] sm:$0xff]  ;;  %vm110_vm2 = vcmask 7168  }
   0xe   :  { %v98_v5 = vmul.f32 %v57_v4, %v55_v1 }
  0x10   :  { %119 = vmatmul.msk.f32.vlgmr.msra.gmra.mxu0 %vm58_vm0, %v55_v1  ;;  %v99_v6 = vsel %vm58_vm0, %v98_v5, 0.0 }
  0x11   :  { %100 = vadd.xlane.f32.xlu1 %v99_v6 }
  0x84   :  { %v101_v15 = vpop.xlane.xlu1 %100 }
  0x8d   :  { %v82_v2 = vpop.f32.mrf.mxu0 }
  0x8e   :  { %v86_v3 = vsel %vm85_vm1, %v82_v2, -inf }
  0x8f   :  { %87 = vmax.xlane.f32.xlu0 %v86_v3 }
 0x102   :  { %v88_v7 = vpop.xlane.xlu0 %87 }
 0x103   :  { %v89_v8 = vsub.f32 %v82_v2, %v88_v7 }
 0x105   :  { %v90_v9 = vmul.f32 1.442695, %v89_v8 }
 0x107   :  { %123 = vpow2.f32 %v90_v9 }
 0x10d   :  { %v124_v10 = vpop.eup %123 }
 0x10e   :  { %v92_v11 = vsel %vm85_vm1, %v124_v10, 0.0 }
 0x10f   :  { %93 = vadd.xlane.f32.xlu0 %v92_v11 }
 0x182   :  { %v94_v12 = vpop.xlane.xlu0 %93 }
 0x183   :  { %125 = vlog2.f32 %v94_v12 }
 0x189   :  { %v126_v13 = vpop.eup %125 }
 0x18a   :  { %v96_v14 = vmul.f32 0.6931472, %v126_v13 }
 0x18c   :  { %v97_v16 = vadd.f32 %v96_v14, %v88_v7 }
 0x18e   :  { %v102_v17 = vsub.f32 %v97_v16, %v101_v15 }
 0x190   :  { %111 = vst.msk [vmem:[%s241_s3] sm:$0xff] %vm110_vm2, %v102_v17 }
 0x191   :  { %116 = vsyncpa [#allocation3], 1 }
 0x192   :  { %117 = vsyncpa [#allocation5], 1 }

</bundles_post_ra>
